<compile_context>
chip_gen: v7x
topology: tpu7x:2x2x1
jax: 0.10.0
libtpu: 0.0.40
codegen_flags: <defaults>
</compile_context>

<pallas_src>
import functools

import jax
import jax.numpy as jnp
from jax.experimental import pallas as pl
from jax.experimental.pallas import tpu as pltpu

NEG_SLOPE = 0.01  # nn.LeakyReLU default negative_slope
# TODO(synk): plumb negative_slope through if the module ever parametrizes it.


def _leaky_relu(x):
    return jnp.where(x > 0, x, NEG_SLOPE * x)


def _round_up(v, m):
    return (v + m - 1) // m * m


def _hybrid_fusion_kernel(x_ref, hal_ref, dww_ref, dwb_ref, pww_ref, pwb_ref,
                          o_ref, acc_ref, *, K, TL, BT, C, OUT, add_residual):
    """One (batch-block, L-tile) grid step.

    x_ref   : (BT*C, TL)      input tile, batches folded onto sublanes
    hal_ref : (BT*C, 2*pad)   [left halo | right halo] columns for this L-tile
    dww_ref : (K, BT*C, 1)    depthwise weights, tap-major, tiled per packed batch
    dwb_ref : (BT*C, 1)       depthwise bias
    pww_ref : (OUT, C)        pointwise (1x1) conv weights
    pwb_ref : (OUT, 1)        pointwise bias
    o_ref   : (BT*OUT, TL)    output tile
    acc_ref : (BT*C, TL) f32  scratch for the depthwise accumulator
    """
    pad = K // 2
    x = x_ref[...].astype(jnp.float32)                        # (BTC, TL)
    w = [dww_ref[k].astype(jnp.float32) for k in range(K)]    # K x (BTC, 1)

    # Depthwise conv: unmasked lane rotations (XLU slot).  The lanes that wrap
    # around are overwritten with exact halo-based values below, so there is
    # no per-tap compare/select work on the VPU.
    acc = w[pad] * x
    for k in range(K):
        if k == pad:
            continue
        acc = acc + w[k] * pltpu.roll(x, shift=(pad - k) % TL, axis=1)
    acc_ref[...] = acc

    if pad > 0:
        hal = hal_ref[...].astype(jnp.float32)                # (BTC, 2*pad)
        for l in range(pad):
            # Left edge: output lane l.
            cl = jnp.zeros((x.shape[0], 1), jnp.float32)
            for k in range(K):
                i = l + k - pad
                src = hal[:, pad + i:pad + i + 1] if i < 0 else x[:, i:i + 1]
                cl = cl + w[k] * src
            acc_ref[:, l:l + 1] = cl
            # Right edge: output lane TL - pad + l.
            cr = jnp.zeros((x.shape[0], 1), jnp.float32)
            for k in range(K):
                i = TL - 2 * pad + l + k
                if i >= TL:
                    src = hal[:, pad + i - TL:pad + i - TL + 1]
                else:
                    src = x[:, i:i + 1]
                cr = cr + w[k] * src
            acc_ref[:, TL - pad + l:TL - pad + l + 1] = cr

    # act(dw(x)) + x
    h = _leaky_relu(acc_ref[...] + dwb_ref[...].astype(jnp.float32)) + x

    # Pointwise (1x1) conv: one MXU matmul per packed batch element.
    pw = pww_ref[...].astype(jnp.float32)
    pwb = pwb_ref[...].astype(jnp.float32)
    for b in range(BT):
        hb = h[b * C:(b + 1) * C, :]
        yb = jnp.dot(pw, hb, preferred_element_type=jnp.float32)
        yb = _leaky_relu(yb + pwb)
        if add_residual:
            yb = yb + x[b * C:(b + 1) * C, :]
        o_ref[b * OUT:(b + 1) * OUT, :] = yb.astype(o_ref.dtype)


def hybrid_fusion(x, dw_w, dw_b, pw_w, pw_b, *, kernel_size, max_lane_tile=512):
    """x: (B, C, L). dw_w: (C,1,K), dw_b: (C,), pw_w: (out,C,1), pw_b: (out,).

    Returns (B, out_dim, L).
    """
    B, C, L = x.shape
    out_dim = pw_w.shape[0]
    K = kernel_size
    if K % 2 == 0:
        # TODO(synk): even kernel_size with pad=K//2 yields L+1 outputs in PyTorch.
        raise NotImplementedError("hybrid_fusion assumes odd kernel_size")
    pad = K // 2

    C_pad = _round_up(C, 8)
    O_pad = _round_up(out_dim, 8)
    TL = min(_round_up(L, 128), _round_up(max(max_lane_tile, 128), 128))
    L_pad = _round_up(L, TL)
    n_l = L_pad // TL

    # Pack several batches per grid step when C is small (amortizes per-step
    # overhead, feeds HBM), capped so one f32 block stays well under 2 MiB.
    BT = max(1, min(B, max(1, 64 // C_pad)))
    while BT > 1 and BT * max(C_pad, O_pad) * TL * 4 > (2 << 20):
        BT -= 1
    B_pad = _round_up(B, BT)
    BTC = BT * C_pad
    R = B_pad * C_pad

    # ---- layout plumbing (plain XLA, outside the kernel) ----
    xp = jnp.pad(x, ((0, B_pad - B), (0, C_pad - C), (0, L_pad - L)))
    xf = xp.reshape(R, L_pad)                  # batch folded onto sublane rows

    HW = max(2 * pad, 1)
    if pad > 0:
        xz = jnp.pad(xf, ((0, 0), (pad, pad)))
        lh = xz[:, :n_l * TL].reshape(R, n_l, TL)[:, :, :pad]
        rh = xz[:, 2 * pad:].reshape(R, n_l, TL)[:, :, TL - pad:]
        halos = jnp.transpose(jnp.concatenate([lh, rh], axis=-1), (1, 0, 2))
    else:
        halos = jnp.zeros((n_l, R, HW), x.dtype)

    dw2 = jnp.pad(dw_w.reshape(C, K), ((0, C_pad - C), (0, 0)))    # (C_pad, K)
    dww = jnp.tile(dw2.T, (1, BT)).reshape(K, BTC, 1)              # tap-major
    dwb = jnp.tile(jnp.pad(dw_b.reshape(C), (0, C_pad - C)), (BT,)).reshape(BTC, 1)
    pww = jnp.pad(pw_w.reshape(out_dim, C),
                  ((0, O_pad - out_dim), (0, C_pad - C)))          # (O_pad, C_pad)
    pwb = jnp.pad(pw_b.reshape(out_dim), (0, O_pad - out_dim)).reshape(O_pad, 1)

    kernel = functools.partial(_hybrid_fusion_kernel, K=K, TL=TL, BT=BT,
                               C=C_pad, OUT=O_pad,
                               add_residual=(C == out_dim))

    # VMEM budget: double-buffered I/O blocks + scratch + a few live temporaries.
    blk_in = BTC * TL * 4
    blk_out = BT * O_pad * TL * 4
    est = (2 * (blk_in + BTC * HW * 4 + blk_out) + blk_in
           + 6 * blk_in + (K + 1) * BTC * 4 + O_pad * (C_pad + 1) * 4)
    vmem_limit = int(min(max(2 * est, 32 * 2**20), 64 * 2**20))

    out_f = pl.pallas_call(
        kernel,
        out_shape=jax.ShapeDtypeStruct((B_pad * O_pad, L_pad), x.dtype),
        grid_spec=pltpu.PrefetchScalarGridSpec(
            num_scalar_prefetch=0,
            grid=(B_pad // BT, n_l),
            in_specs=[
                pl.BlockSpec((BTC, TL), lambda bi, j: (bi, j)),
                pl.BlockSpec((None, BTC, HW), lambda bi, j: (j, bi, 0)),
                pl.BlockSpec((K, BTC, 1), lambda bi, j: (0, 0, 0)),
                pl.BlockSpec((BTC, 1), lambda bi, j: (0, 0)),
                pl.BlockSpec((O_pad, C_pad), lambda bi, j: (0, 0)),
                pl.BlockSpec((O_pad, 1), lambda bi, j: (0, 0)),
            ],
            out_specs=pl.BlockSpec((BT * O_pad, TL), lambda bi, j: (bi, j)),
            scratch_shapes=[pltpu.VMEM((BTC, TL), jnp.float32)],
        ),
        compiler_params=pltpu.CompilerParams(
            dimension_semantics=("parallel", "parallel"),
            vmem_limit_bytes=vmem_limit),
    )(xf, halos, dww, dwb, pww, pwb)

    return out_f.reshape(B_pad, O_pad, L_pad)[:B, :out_dim, :L]


def hybrid_fusion_ref(x, dw_w, dw_b, pw_w, pw_b, *, kernel_size):
    """Pure-JAX reference replicating the PyTorch forward (stride=1)."""
    B, C, L = x.shape
    out_dim = pw_w.shape[0]
    K = kernel_size
    pad = K // 2
    xpad = jnp.pad(x, ((0, 0), (0, 0), (pad, pad)))
    dw = sum(dw_w.reshape(C, K)[:, k][None, :, None] * xpad[:, :, k:k + L]
             for k in range(K)) + dw_b.reshape(1, C, 1)
    h = _leaky_relu(dw) + x
    y = jnp.einsum('oc,bcl->bol', pw_w.reshape(out_dim, C), h) \
        + pw_b.reshape(1, out_dim, 1)
    y = _leaky_relu(y)
    return y + x if C == out_dim else y


if __name__ == "__main__":
    def run_case(idx, B, C, L, K, out_dim, max_lane_tile=512):
        key = jax.random.fold_in(jax.random.PRNGKey(0), idx)
        kx, k1, k2, k3, k4 = jax.random.split(key, 5)
        x = jax.random.normal(kx, (B, C, L), jnp.float32)
        dw_w = 0.1 * jax.random.normal(k1, (C, 1, K), jnp.float32)
        dw_b = 0.1 * jax.random.normal(k2, (C,), jnp.float32)
        pw_w = 0.1 * jax.random.normal(k3, (out_dim, C, 1), jnp.float32)
        pw_b = 0.1 * jax.random.normal(k4, (out_dim,), jnp.float32)

        out = hybrid_fusion(x, dw_w, dw_b, pw_w, pw_b, kernel_size=K,
                            max_lane_tile=max_lane_tile)
        out = jax.block_until_ready(out)

        ref = hybrid_fusion_ref(x, dw_w, dw_b, pw_w, pw_b, kernel_size=K)
        assert out.shape == ref.shape, f"case {idx}: shape mismatch"
        err = jnp.max(jnp.abs(out - ref))
        assert jnp.allclose(out, ref, atol=1e-4, rtol=1e-4), \
            f"case {idx}: mismatch vs reference (max abs err {err})"

    # dim == out_dim (both residual adds), single L tile, batch-packed step.
    run_case(0, B=2, C=8, L=128, K=3, out_dim=8)
    # dim != out_dim (final residual skipped, as in PyTorch), K=5.
    run_case(1, B=2, C=8, L=256, K=5, out_dim=16)
    # Non-(8,128)-aligned dims + multiple L tiles (halo path) + residual.
    run_case(2, B=3, C=6, L=200, K=5, out_dim=6, max_lane_tile=128)
    # More batches than one packed block (batch padding path), 2 L tiles.
    run_case(3, B=9, C=8, L=256, K=3, out_dim=8, max_lane_tile=128)

    print("KERNEL_OK")
</pallas_src>

<mosaic_0001>
module attributes {stable_mosaic.version = 11 : i64} {
  func.func @_hybrid_fusion_kernel(%arg0: i32, %arg1: i32, %arg2: memref<16x128xf32, #tpu.memory_space<vmem>>, %arg3: memref<1x16x2xf32, #tpu.memory_space<vmem>>, %arg4: memref<3x16x1xf32, #tpu.memory_space<vmem>>, %arg5: memref<16x1xf32, #tpu.memory_space<vmem>>, %arg6: memref<8x8xf32, #tpu.memory_space<vmem>>, %arg7: memref<8x1xf32, #tpu.memory_space<vmem>>, %arg8: memref<16x128xf32, #tpu.memory_space<vmem>>, %arg9: memref<16x128xf32, #tpu.memory_space<vmem>>) attributes {dimension_semantics = [#tpu.dimension_semantics<parallel>, #tpu.dimension_semantics<parallel>], iteration_bounds = array<i64: 1, 1>, scalar_prefetch = 0 : i64, scratch_operands = 1 : i64, tpu.core_type = #tpu.core_type<tc>, window_params = [{transform_indices = @transform_0, window_bounds = array<i64: 16, 128>}, {transform_indices = @transform_1, window_bounds = array<i64: 1, 16, 2>}, {pipeline_mode = #tpu.pipeline_mode<synchronous>, transform_indices = @transform_2, window_bounds = array<i64: 3, 16, 1>}, {pipeline_mode = #tpu.pipeline_mode<synchronous>, transform_indices = @transform_3, window_bounds = array<i64: 16, 1>}, {pipeline_mode = #tpu.pipeline_mode<synchronous>, transform_indices = @transform_4, window_bounds = array<i64: 8, 8>}, {pipeline_mode = #tpu.pipeline_mode<synchronous>, transform_indices = @transform_5, window_bounds = array<i64: 8, 1>}, {transform_indices = @transform_6, window_bounds = array<i64: 16, 128>}]} {
    %c0 = arith.constant 0 : index
    %c0_0 = arith.constant 0 : index
    %0 = vector.load %arg2[%c0, %c0_0] : memref<16x128xf32, #tpu.memory_space<vmem>>, vector<16x128xf32>
    %c0_1 = arith.constant 0 : index
    %c0_2 = arith.constant 0 : index
    %c0_3 = arith.constant 0 : index
    %1 = vector.load %arg4[%c0_1, %c0_2, %c0_3] : memref<3x16x1xf32, #tpu.memory_space<vmem>>, vector<1x16x1xf32>
    %2 = vector.shape_cast %1 : vector<1x16x1xf32> to vector<16x1xf32>
    %c1 = arith.constant 1 : index
    %c0_4 = arith.constant 0 : index
    %c0_5 = arith.constant 0 : index
    %3 = vector.load %arg4[%c1, %c0_4, %c0_5] : memref<3x16x1xf32, #tpu.memory_space<vmem>>, vector<1x16x1xf32>
    %4 = vector.shape_cast %3 : vector<1x16x1xf32> to vector<16x1xf32>
    %c2 = arith.constant 2 : index
    %c0_6 = arith.constant 0 : index
    %c0_7 = arith.constant 0 : index
    %5 = vector.load %arg4[%c2, %c0_6, %c0_7] : memref<3x16x1xf32, #tpu.memory_space<vmem>>, vector<1x16x1xf32>
    %6 = vector.shape_cast %5 : vector<1x16x1xf32> to vector<16x1xf32>
    %7 = vector.broadcast %4 : vector<16x1xf32> to vector<16x128xf32>
    %8 = arith.mulf %7, %0 : vector<16x128xf32>
    %c1_i32 = arith.constant 1 : i32
    %9 = tpu.dynamic_rotate %0 by %c1_i32 dim 1 : vector<16x128xf32>, i32 -> vector<16x128xf32>
    %10 = vector.broadcast %2 : vector<16x1xf32> to vector<16x128xf32>
    %11 = arith.mulf %10, %9 : vector<16x128xf32>
    %12 = arith.addf %8, %11 : vector<16x128xf32>
    %c127_i32 = arith.constant 127 : i32
    %13 = tpu.dynamic_rotate %0 by %c127_i32 dim 1 : vector<16x128xf32>, i32 -> vector<16x128xf32>
    %14 = vector.broadcast %6 : vector<16x1xf32> to vector<16x128xf32>
    %15 = arith.mulf %14, %13 : vector<16x128xf32>
    %16 = arith.addf %12, %15 : vector<16x128xf32>
    %c0_8 = arith.constant 0 : index
    %c0_9 = arith.constant 0 : index
    %17 = vector.load %arg9[%c0_8, %c0_9] : memref<16x128xf32, #tpu.memory_space<vmem>>, vector<16x128xf32>
    tpu.vector_store %arg9[%c0_8, %c0_9], %16 {strides = array<i32>} : memref<16x128xf32, #tpu.memory_space<vmem>>, vector<16x128xf32>,
    %c0_10 = arith.constant 0 : index
    %c0_11 = arith.constant 0 : index
    %c0_12 = arith.constant 0 : index
    %18 = vector.load %arg3[%c0_10, %c0_11, %c0_12] : memref<1x16x2xf32, #tpu.memory_space<vmem>>, vector<1x16x2xf32>
    %19 = vector.shape_cast %18 : vector<1x16x2xf32> to vector<16x2xf32>
    %cst = arith.constant 0.000000e+00 : f32
    %20 = vector.broadcast %cst : f32 to vector<16x1xf32>
    %21 = vector.extract_strided_slice %19 {offsets = [0, 0], sizes = [16, 1], strides = [1, 1]} : vector<16x2xf32> to vector<16x1xf32>
    %22 = arith.mulf %2, %21 : vector<16x1xf32>
    %23 = arith.addf %20, %22 : vector<16x1xf32>
    %24 = vector.extract_strided_slice %0 {offsets = [0, 0], sizes = [16, 1], strides = [1, 1]} : vector<16x128xf32> to vector<16x1xf32>
    %25 = arith.mulf %4, %24 : vector<16x1xf32>
    %26 = arith.addf %23, %25 : vector<16x1xf32>
    %27 = vector.extract_strided_slice %0 {offsets = [0, 1], sizes = [16, 1], strides = [1, 1]} : vector<16x128xf32> to vector<16x1xf32>
    %28 = arith.mulf %6, %27 : vector<16x1xf32>
    %29 = arith.addf %26, %28 : vector<16x1xf32>
    %c0_13 = arith.constant 0 : index
    %c0_14 = arith.constant 0 : index
    %30 = vector.load %arg9[%c0_13, %c0_14] : memref<16x128xf32, #tpu.memory_space<vmem>>, vector<16x1xf32>
    tpu.vector_store %arg9[%c0_13, %c0_14], %29 {strides = array<i32>} : memref<16x128xf32, #tpu.memory_space<vmem>>, vector<16x1xf32>,
    %cst_15 = arith.constant 0.000000e+00 : f32
    %31 = vector.broadcast %cst_15 : f32 to vector<16x1xf32>
    %32 = vector.extract_strided_slice %0 {offsets = [0, 126], sizes = [16, 1], strides = [1, 1]} : vector<16x128xf32> to vector<16x1xf32>
    %33 = arith.mulf %2, %32 : vector<16x1xf32>
    %34 = arith.addf %31, %33 : vector<16x1xf32>
    %35 = vector.extract_strided_slice %0 {offsets = [0, 127], sizes = [16, 1], strides = [1, 1]} : vector<16x128xf32> to vector<16x1xf32>
    %36 = arith.mulf %4, %35 : vector<16x1xf32>
    %37 = arith.addf %34, %36 : vector<16x1xf32>
    %38 = vector.extract_strided_slice %19 {offsets = [0, 1], sizes = [16, 1], strides = [1, 1]} : vector<16x2xf32> to vector<16x1xf32>
    %39 = arith.mulf %6, %38 : vector<16x1xf32>
    %40 = arith.addf %37, %39 : vector<16x1xf32>
    %c0_16 = arith.constant 0 : index
    %c127 = arith.constant 127 : index
    %41 = vector.load %arg9[%c0_16, %c127] : memref<16x128xf32, #tpu.memory_space<vmem>>, vector<16x1xf32>
    tpu.vector_store %arg9[%c0_16, %c127], %40 {strides = array<i32>} : memref<16x128xf32, #tpu.memory_space<vmem>>, vector<16x1xf32>,
    %c0_17 = arith.constant 0 : index
    %c0_18 = arith.constant 0 : index
    %42 = vector.load %arg9[%c0_17, %c0_18] : memref<16x128xf32, #tpu.memory_space<vmem>>, vector<16x128xf32>
    %c0_19 = arith.constant 0 : index
    %c0_20 = arith.constant 0 : index
    %43 = vector.load %arg5[%c0_19, %c0_20] : memref<16x1xf32, #tpu.memory_space<vmem>>, vector<16x1xf32>
    %44 = vector.broadcast %43 : vector<16x1xf32> to vector<16x128xf32>
    %45 = arith.addf %42, %44 : vector<16x128xf32>
    %cst_21 = arith.constant 0.000000e+00 : f32
    %46 = vector.broadcast %cst_21 : f32 to vector<16x128xf32>
    %47 = arith.cmpf ogt, %45, %46 : vector<16x128xf32>
    %cst_22 = arith.constant 0.00999999977 : f32
    %48 = vector.broadcast %cst_22 : f32 to vector<16x128xf32>
    %49 = arith.mulf %48, %45 : vector<16x128xf32>
    %50 = arith.select %47, %45, %49 : vector<16x128xi1>, vector<16x128xf32>
    %51 = arith.addf %50, %0 : vector<16x128xf32>
    %c0_23 = arith.constant 0 : index
    %c0_24 = arith.constant 0 : index
    %52 = vector.load %arg6[%c0_23, %c0_24] : memref<8x8xf32, #tpu.memory_space<vmem>>, vector<8x8xf32>
    %c0_25 = arith.constant 0 : index
    %c0_26 = arith.constant 0 : index
    %53 = vector.load %arg7[%c0_25, %c0_26] : memref<8x1xf32, #tpu.memory_space<vmem>>, vector<8x1xf32>
    %54 = vector.extract_strided_slice %51 {offsets = [0, 0], sizes = [8, 128], strides = [1, 1]} : vector<16x128xf32> to vector<8x128xf32>
    %cst_27 = arith.constant dense<0.000000e+00> : vector<8x128xf32>
    %55 = tpu.matmul %52, %54, %cst_27 {dimension_numbers = #tpu.dot_dimension_numbers<[1], [0], [0], [1], [0, 0, 1, 1], [], []>} : vector<8x8xf32>, vector<8x128xf32>, vector<8x128xf32> -> vector<8x128xf32>
    %56 = vector.broadcast %53 : vector<8x1xf32> to vector<8x128xf32>
    %57 = arith.addf %55, %56 : vector<8x128xf32>
    %cst_28 = arith.constant 0.000000e+00 : f32
    %58 = vector.broadcast %cst_28 : f32 to vector<8x128xf32>
    %59 = arith.cmpf ogt, %57, %58 : vector<8x128xf32>
    %cst_29 = arith.constant 0.00999999977 : f32
    %60 = vector.broadcast %cst_29 : f32 to vector<8x128xf32>
    %61 = arith.mulf %60, %57 : vector<8x128xf32>
    %62 = arith.select %59, %57, %61 : vector<8x128xi1>, vector<8x128xf32>
    %63 = vector.extract_strided_slice %0 {offsets = [0, 0], sizes = [8, 128], strides = [1, 1]} : vector<16x128xf32> to vector<8x128xf32>
    %64 = arith.addf %62, %63 : vector<8x128xf32>
    %c0_30 = arith.constant 0 : index
    %c0_31 = arith.constant 0 : index
    %65 = vector.load %arg8[%c0_30, %c0_31] : memref<16x128xf32, #tpu.memory_space<vmem>>, vector<8x128xf32>
    tpu.vector_store %arg8[%c0_30, %c0_31], %64 {strides = array<i32>} : memref<16x128xf32, #tpu.memory_space<vmem>>, vector<8x128xf32>,
    %66 = vector.extract_strided_slice %51 {offsets = [8, 0], sizes = [8, 128], strides = [1, 1]} : vector<16x128xf32> to vector<8x128xf32>
    %cst_32 = arith.constant dense<0.000000e+00> : vector<8x128xf32>
    %67 = tpu.matmul %52, %66, %cst_32 {dimension_numbers = #tpu.dot_dimension_numbers<[1], [0], [0], [1], [0, 0, 1, 1], [], []>} : vector<8x8xf32>, vector<8x128xf32>, vector<8x128xf32> -> vector<8x128xf32>
    %68 = vector.broadcast %53 : vector<8x1xf32> to vector<8x128xf32>
    %69 = arith.addf %67, %68 : vector<8x128xf32>
    %cst_33 = arith.constant 0.000000e+00 : f32
    %70 = vector.broadcast %cst_33 : f32 to vector<8x128xf32>
    %71 = arith.cmpf ogt, %69, %70 : vector<8x128xf32>
    %cst_34 = arith.constant 0.00999999977 : f32
    %72 = vector.broadcast %cst_34 : f32 to vector<8x128xf32>
    %73 = arith.mulf %72, %69 : vector<8x128xf32>
    %74 = arith.select %71, %69, %73 : vector<8x128xi1>, vector<8x128xf32>
    %75 = vector.extract_strided_slice %0 {offsets = [8, 0], sizes = [8, 128], strides = [1, 1]} : vector<16x128xf32> to vector<8x128xf32>
    %76 = arith.addf %74, %75 : vector<8x128xf32>
    %c8 = arith.constant 8 : index
    %c0_35 = arith.constant 0 : index
    %77 = vector.load %arg8[%c8, %c0_35] : memref<16x128xf32, #tpu.memory_space<vmem>>, vector<8x128xf32>
    tpu.vector_store %arg8[%c8, %c0_35], %76 {strides = array<i32>} : memref<16x128xf32, #tpu.memory_space<vmem>>, vector<8x128xf32>,
    return
  }
  func.func @transform_0(%arg0: i32, %arg1: i32) -> (i32, i32) {
    %c0_i32 = arith.constant 0 : i32
    return %arg0, %arg1 : i32, i32
  }
  func.func @transform_1(%arg0: i32, %arg1: i32) -> (i32, i32, i32) {
    %c0_i32 = arith.constant 0 : i32
    %c0_i32_0 = arith.constant 0 : i32
    return %arg1, %arg0, %c0_i32 : i32, i32, i32
  }
  func.func @transform_2(%arg0: i32, %arg1: i32) -> (i32, i32, i32) {
    %c0_i32 = arith.constant 0 : i32
    %c0_i32_0 = arith.constant 0 : i32
    %c0_i32_1 = arith.constant 0 : i32
    %c0_i32_2 = arith.constant 0 : i32
    return %c0_i32, %c0_i32_0, %c0_i32_1 : i32, i32, i32
  }
  func.func @transform_3(%arg0: i32, %arg1: i32) -> (i32, i32) {
    %c0_i32 = arith.constant 0 : i32
    %c0_i32_0 = arith.constant 0 : i32
    %c0_i32_1 = arith.constant 0 : i32
    return %c0_i32, %c0_i32_0 : i32, i32
  }
  func.func @transform_4(%arg0: i32, %arg1: i32) -> (i32, i32) {
    %c0_i32 = arith.constant 0 : i32
    %c0_i32_0 = arith.constant 0 : i32
    %c0_i32_1 = arith.constant 0 : i32
    return %c0_i32, %c0_i32_0 : i32, i32
  }
  func.func @transform_5(%arg0: i32, %arg1: i32) -> (i32, i32) {
    %c0_i32 = arith.constant 0 : i32
    %c0_i32_0 = arith.constant 0 : i32
    %c0_i32_1 = arith.constant 0 : i32
    return %c0_i32, %c0_i32_0 : i32, i32
  }
  func.func @transform_6(%arg0: i32, %arg1: i32) -> (i32, i32) {
    %c0_i32 = arith.constant 0 : i32
    return %arg0, %arg1 : i32, i32
  }
}

</mosaic_0001>

<bundles_post_ra>
// kernel: tpu_custom_call.1
= control target key start
LH: loop header
LB: loop body
LE: loop exit
PB: predicated region body
PF: predicated region fallthrough
CT: control target
= control target key end

     0   :  { %s408_s23 = smov 1   ;;  %s409_s24 = smov 2   ;;  %v410_v2 = vmov 0   ;;  %s554_s0 = inlined_call_operand.vmem [shape: f32[16,128], index: 0, kind: input, shape index: {}]   ;;  %s555_s1 = inlined_call_operand.vmem [shape: f32[1,16,2], index: 1, kind: input, shape index: {}]   ;;  %s556_s2 = inlined_call_operand.vmem [shape: f32[3,16,1], index: 2, kind: input, shape index: {}]   ;;  %s557_s3 = inlined_call_operand.vmem [shape: f32[16,1], index: 3, kind: input, shape index: {}]   ;;  %s558_s4 = inlined_call_operand.vmem [shape: f32[8,8], index: 4, kind: input, shape index: {}]   ;;  %s559_s5 = inlined_call_operand.vmem [shape: f32[8,1], index: 5, kind: input, shape index: {}]   ;;  %s560_s6 = inlined_call_operand.hbm [shape: f32[16,128], index: 6, kind: output, shape index: {}]  }
   0x1   :  { %v455_v0 = vld [vmem:[%s554_s0] sm:$0xff]  ;;  %v462_v1 = vld [vmem:[%s554_s0 + $0x8] sm:$0xff]  ;;  %383 = vset.pattern.permute.xlu1 %v410_v2  ;;  %382 = vset.pattern.permute.xlu0 %v410_v2 }
   0x2   :  { %119 = vrot.lane.b32.xlu1 %v455_v0, %s408_s23  ;;  %109 = vrot.lane.b32.xlu0 %v455_v0, %s409_s24 }
   0x3   :  { %11 = vsyncpa [#allocation4], 0  ;;  %v469_v3 = vld [vmem:[%s555_s1 + $0x8] sm:$0xff]  ;;  %v474_v4 = vld [vmem:[%s555_s1] sm:$0xff]  ;;  %s411_s0 = smov 127   ;;  %v412_v30 = vmov 0.0  }
   0x4   :  { %v354_v5 = vld [vmem:[%s556_s2 + $0x18] sm:$0xff]  ;;  %v353_v6 = vld [vmem:[%s556_s2 + $0x10] sm:$0xff]  ;;  %v26_v7 = vld [vmem:[%s556_s2] sm:$0xff]  ;;  %363 = vmatprep.subr.mxu0 %v412_v30  ;;  %368 = vmatprep.subr.mxu1 %v412_v30  ;;  %vm413_vm0 = vmmov 0   ;;  %vm106_vm1 = vcmask 7168   ;;  %vm149_vm2 = vcmask 1048568  }
   0x5   :  { %v27_v8 = vld [vmem:[%s556_s2 + $0x8] sm:$0xff]  ;;  %v495_v9 = vld [vmem:[%s556_s2 + $0x20] sm:$0xff]  ;;  %365 = vmatprep.mubr.msk.f32.mxu0 %vm413_vm0, %v412_v30  ;;  %370 = vmatprep.mubr.msk.f32.mxu1 %vm413_vm0, %v412_v30  ;;  %v91_v43 = vmul.f32 %v354_v5, %v462_v1  ;;  %v90_v44 = vmul.f32 %v353_v6, %v455_v0  ;;  %v86_v45 = vmul.f32 %v474_v4, %v26_v7  ;;  %vm183_vm5 = vcmask 64512  }
   0x6   :  { %121 = vrot.lane.b32.xlu1 %v462_v1, %s408_s23  ;;  %111 = vrot.lane.b32.xlu0 %v462_v1, %s409_s24  ;;  %v500_v10 = vld [vmem:[%s556_s2 + $0x28] sm:$0xff]  ;;  %v154_v28 = vld [vmem:[%s557_s3] sm:$0xff]  ;;  %v87_v46 = vmul.f32 %v469_v3, %v27_v8 }
   0x7   :  { %v155_v27 = vld [vmem:[%s557_s3 + $0x8] sm:$0xff]  ;;  %v177_v29 = vld [vmem:[%s559_s5] sm:$0xff]  ;;  %v92_v55 = vadd.f32 %v90_v44, %v86_v45 }
   0x8   :  { %v93_v56 = vadd.f32 %v91_v43, %v87_v46 }
   0xa   :  { %133 = vrot.lane.b32.xlu1 %v469_v3, %s411_s0  ;;  %131 = vrot.lane.b32.xlu0 %v474_v4, %s411_s0 }
   0xe   :  { %41 = vperm.xlu1 %383, %v354_v5   ;;  %36 = vperm.xlu0 %382, %v353_v6  }
  0x12   :  { %52 = vperm.xlu1 %383, %v26_v7   ;;  %57 = vperm.xlu0 %382, %v27_v8  }
  0x16   :  { %70 = vperm.xlu1 %383, %v495_v9   ;;  %75 = vperm.xlu0 %382, %v500_v10  }
  0x1a   :  { %46 = vrot.lane.b32.xlu1 %v455_v0, %s408_s23  ;;  %48 = vrot.lane.b32.xlu0 %v462_v1, %s408_s23  ;;  %s414_s23 = smov [#allocation3]  }
  0x1b   :  { %s342_s24 = sshll.u32 %s414_s23, 4  ;;  %s343_s24 = int_to_ptr.vmem [resolvable:$true] %s342_s24 }
  0x1c   :  { %p389_p1 = scmp.lt.s32.totalorder %s343_s24, %s343_s24 }
  0x1e   :  { %64 = vrot.lane.b32.xlu1 %v455_v0, %s411_s0  ;;  %66 = vrot.lane.b32.xlu0 %v462_v1, %s411_s0 }
  0x22   :  { %96 = vrot.lane.b32.xlu1 %v455_v0, %s411_s0  ;;  %98 = vrot.lane.b32.xlu0 %v462_v1, %s411_s0 }
  0x74   :  { %v120_v11 = vpop.permute.xlu1 %119  ;;  %v110_v12 = vpop.permute.xlu0 %109 }
  0x75   :  { %v125_v15 = vmul.f32 %v353_v6, %v120_v11  ;;  %v115_v16 = vmul.f32 %v110_v12, %v26_v7 }
  0x77   :  { %v127_v21 = vadd.f32 %v125_v15, %v115_v16  ;;  %v176_v15 = vld [vmem:[%s558_s4] sm:$0xff]  ;;  %s384_s4 = scalar_lea.vmem %s343_s24, 256 }
  0x78   :  { %v122_v13 = vpop.permute.xlu1 %121  ;;  %v112_v14 = vpop.permute.xlu0 %111  ;;  %p385_p0 = scmp.ne.s32.totalorder %s343_s24, %s384_s4  ;;  %p390_p2 = scmp.lt.s32.totalorder %s384_s4, %s384_s4 }
  0x79   :  { %v126_v17 = vmul.f32 %v354_v5, %v122_v13  ;;  %v116_v18 = vmul.f32 %v112_v14, %v27_v8 }
  0x7a   :  { %p391_p3 = por %p390_p2, %p389_p1 }
  0x7b   :  { %v128_v22 = vadd.f32 %v126_v17, %v116_v18 }
  0x7c   :  { %v134_v19 = vpop.permute.xlu1 %133  ;;  %v132_v20 = vpop.permute.xlu0 %131  ;;  %p392_p4 = pnand %p391_p3, %p385_p0 }
  0x7d   :  { %v138_v23 = vmul.f32 %v500_v10, %v134_v19  ;;  %v137_v24 = vmul.f32 %v495_v9, %v132_v20 }
  0x7f   :  { %v140_v25 = vadd.f32 %v138_v23, %v128_v22  ;;  %v139_v26 = vadd.f32 %v137_v24, %v127_v21 }
  0x81   :  { %145 = vrot.lane.b32.xlu0 %v140_v25, %s411_s0  ;;  %143 = vrot.lane.b32.xlu1 %v139_v26, %s411_s0 }
  0x85   :  { %163 = vperm.xlu0 %382, %v155_v27   ;;  %158 = vperm.xlu1 %383, %v154_v28  }
  0x89   :  { %180 = vperm.xlu1 %383, %v177_v29  }
  0x8d   :  { %v42_v31 = vpop.permute.xlu1 %41  ;;  %v37_v32 = vpop.permute.xlu0 %36 }
  0x8e   :  { %v45_v37 = vmul.f32 %v42_v31, %v462_v1  ;;  %v44_v38 = vmul.f32 %v37_v32, %v455_v0 }
  0x91   :  { %v53_v33 = vpop.permute.xlu1 %52  ;;  %v58_v34 = vpop.permute.xlu0 %57 }
  0x95   :  { %v71_v35 = vpop.permute.xlu1 %70  ;;  %v76_v36 = vpop.permute.xlu0 %75 }
  0x99   :  { %v47_v39 = vpop.permute.xlu1 %46  ;;  %v49_v40 = vpop.permute.xlu0 %48 }
  0x9a   :  { %v60_v41 = vmul.f32 %v53_v33, %v47_v39  ;;  %v61_v42 = vmul.f32 %v58_v34, %v49_v40 }
  0x9c   :  { %v62_v47 = vadd.f32 %v60_v41, %v44_v38  ;;  %v63_v48 = vadd.f32 %v61_v42, %v45_v37 }
  0x9d   :  { %v65_v49 = vpop.permute.xlu1 %64  ;;  %v67_v50 = vpop.permute.xlu0 %66 }
  0x9e   :  { %v78_v51 = vmul.f32 %v71_v35, %v65_v49  ;;  %v79_v52 = vmul.f32 %v76_v36, %v67_v50 }
  0xa0   :  { %v80_v53 = vadd.f32 %v78_v51, %v62_v47  ;;  %v81_v54 = vadd.f32 %v79_v52, %v63_v48 }
  0xa1   :  { %v97_v57 = vpop.permute.xlu1 %96  ;;  %v99_v58 = vpop.permute.xlu0 %98 }
  0xa2   :  { %82 = vst [vmem:[#allocation2] sm:$0xff] %v80_v53  ;;  %83 = vst [vmem:[#allocation2 + $0x8] sm:$0xff] %v81_v54  ;;  %v102_v59 = vmul.f32 %v495_v9, %v97_v57  ;;  %v103_v60 = vmul.f32 %v500_v10, %v99_v58 }
  0xa4   :  { %v104_v61 = vadd.f32 %v102_v59, %v92_v55  ;;  %v105_v62 = vadd.f32 %v103_v60, %v93_v56 }
  0xa6   :  { %107 = vst.msk [vmem:[#allocation2] sm:$0xff] %vm106_vm1, %v104_v61  ;;  %108 = vst.msk [vmem:[#allocation2 + $0x8] sm:$0xff] %vm106_vm1, %v105_v62 }
  0xf3   :  { %v144_v63 = vpop.permute.xlu1 %143  ;;  %v146_v2 = vpop.permute.xlu0 %145 }
  0xf4   :  { %150 = vst.msk [vmem:[#allocation2] sm:$0xff] %vm149_vm2, %v144_v63  ;;  %151 = vst.msk [vmem:[#allocation2 + $0x8] sm:$0xff] %vm149_vm2, %v146_v2 }
  0xfb   :  { %v152_v4 = vld [vmem:[#allocation2] sm:$0xff]  ;;  %v153_v5 = vld [vmem:[#allocation2 + $0x8] sm:$0xff] }
 0x104   :  { %v159_v3 = vpop.permute.xlu1 %158  ;;  %v164_v6 = vpop.permute.xlu0 %163 }
 0x105   :  { %v166_v7 = vadd.f32 %v159_v3, %v152_v4  ;;  %v167_v8 = vadd.f32 %v164_v6, %v153_v5 }
 0x107   :  { %v170_v11 = vmul.f32 0.01, %v166_v7  ;;  %v171_v9 = vmul.f32 0.01, %v167_v8  ;;  %vm168_vm3 = vcmp.gt.f32.partialorder %v166_v7, 0.0  ;;  %vm169_vm4 = vcmp.gt.f32.partialorder %v167_v8, 0.0 }
 0x108   :  { %v181_v16 = vpop.permute.xlu1 %180 }
 0x109   :  { %v172_v10 = vsel %vm168_vm3, %v166_v7, %v170_v11  ;;  %v173_v12 = vsel %vm169_vm4, %v167_v8, %v171_v9 }
 0x10a   :  { %v174_v13 = vadd.f32 %v172_v10, %v455_v0  ;;  %v175_v14 = vadd.f32 %v173_v12, %v462_v1 }
 0x10c   :  { %364 = vmatpush3.msra.mxu0 %v174_v13  ;;  %369 = vmatpush3.msra.mxu1 %v175_v14 }
 0x10d   :  { %366 = vmatmul.mubr.msk.f32.vlgmr.msra.gmra.mrb[0].mxu0 %vm183_vm5, %v176_v15  ;;  %371 = vmatmul.mubr.msk.f32.vlgmr.msra.gmra.mrb[0].mxu1 %vm183_vm5, %v176_v15 }
 0x1e0   :  { %v253_v17 = vpop.f32.mrb[0].mxu0  ;;  %v328_v18 = vpop.f32.mrb[0].mxu1 }
 0x1e1   :  { %v254_v19 = vadd.f32 %v253_v17, %v181_v16  ;;  %v329_v20 = vadd.f32 %v328_v18, %v181_v16  ;;  %v367_v21 = vpop.f32.mrb[1].mxu0  ;;  %v372_v22 = vpop.f32.mrb[1].mxu1 }
 0x1e3   :  { %vm257_vm6 = vcmp.gt.f32.partialorder %v254_v19, 0.0  ;;  %v258_v23 = vmul.f32 0.01, %v254_v19  ;;  %vm332_vm7 = vcmp.gt.f32.partialorder %v329_v20, 0.0  ;;  %v333_v24 = vmul.f32 0.01, %v329_v20 }
 0x1e5   :  { %v259_v25 = vsel %vm257_vm6, %v254_v19, %v258_v23  ;;  %v334_v26 = vsel %vm332_vm7, %v329_v20, %v333_v24 }
 0x1e6   :  { %v260_v27 = vadd.f32 %v259_v25, %v455_v0  ;;  %v335_v28 = vadd.f32 %v334_v26, %v462_v1 }
 0x1e8   :  { %261 = vst [vmem:[#allocation3] sm:$0xff] %v260_v27  ;;  %336 = vst [vmem:[#allocation3 + $0x8] sm:$0xff] %v335_v28 }
 0x1e9   :  { %395 = shalt.err (!%p392_p4)
}
 0x1ea   :  { %s396_s27 = scalar_lea.hbm %s560_s6, 256 }
 0x1eb   :  { %p397_p5 = scmp.ne.s32.totalorder %s560_s6, %s396_s27  ;;  %p400_p6 = scmp.lt.u32.totalorder %s396_s27, %s560_s6 }
 0x1ed   :  { %p402_p7 = pnand %p400_p6, %p397_p5 }
 0x1ef   :  { %405 = shalt.err (!%p402_p7)
}
 0x1f0   :  { %s415_s7 = smov 128   ;;  %s416_s8 = smov 8  }
 0x1f1   :  { %348 = dma.vmem_to_hbm [thread:$0]  %s343_s24, 256, %s560_s6, [#allocation4], %s415_s7, %s415_s7, %s416_s8  }
 0x1f2   :  { %406 = dma.done.wait [#allocation4], 256  }
 0x1f3   :  { %407 = vsyncadd [#allocation4], 4294967040 }
 0x1f4   :  { %352 = vsyncpa [#allocation4], 1 }

</bundles_post_ra>
